<compile_context>
chip_gen: v7x
topology: tpu7x:2x2x1
jax: 0.10.0
libtpu: 0.0.40
codegen_flags: <defaults>
</compile_context>

<pallas_src>
import jax
import jax.numpy as jnp
from jax import lax
from jax.experimental import pallas as pl
from jax.experimental.pallas import tpu as pltpu

MAX_REL_POS = 10      # g_max_relevance_pos  -> columns 0..10
MAX_TIME_POS = 50     # g_max_datetime_pos   -> columns 11..61
NUM_COLS = 64         # 11 + 51 = 62, padded to a sublane-aligned 64
CHUNK = 256           # lanes processed per inner-loop iteration
MAX_ROW_TILE = 2048   # lanes per grid step (upper bound)


def _round_up(x, m):
    return ((x + m - 1) // m) * m


def examination_kernel(idx_ref, tab_ref, w2_ref, b2_ref, out_ref):
    """One grid step processes `row_tile` documents, laid out lane-dense.

    idx_ref : (1, 1, T) int32 -- packed (rel | time<<16), pre-clipped in wrapper
    tab_ref : (E, 64)   f32   -- fused table (W1, b1 folded; rel cols 0..10,
                                 time cols 11..61, 62..63 zero)
    w2_ref  : (E, CHUNK) f32  -- final-layer weights, lane-replicated
    b2_ref  : (1,)      f32   -- final-layer bias (SMEM scalar)
    out_ref : (1, 1, T) f32
    """
    tab = tab_ref[...]                       # (E, 64)   -- hoisted, 1 vreg
    w2 = w2_ref[...]                         # (E, CHUNK) -- hoisted
    b2 = b2_ref[0]                           # scalar from SMEM
    n_chunks = out_ref.shape[2] // CHUNK

    def body(c, carry):
        start = pl.multiple_of(c * CHUNK, CHUNK)
        packed = idx_ref[0, :, pl.ds(start, CHUNK)]            # (1, CHUNK) int32
        rel = packed & 0xFFFF                                   # relevance pos col
        tim11 = (packed >> 16) + (MAX_REL_POS + 1)              # datetime pos col
        mask = (packed != 0).astype(jnp.float32)                # (1, CHUNK)

        # Combined "two-hot": exactly one 1 in rows 0..10 and one in rows 11..61
        # per document column (ranges never collide).
        iota = lax.broadcasted_iota(jnp.int32, (NUM_COLS, CHUNK), 0)
        two_hot = ((iota == rel) | (iota == tim11)).astype(jnp.float32)  # (64, CHUNK)

        # h1^T = tanh(F @ two_hot)  -- single fused MXU matmul per chunk.
        h1 = jnp.tanh(jnp.dot(tab, two_hot, preferred_element_type=jnp.float32))

        # Final 16 -> 1 layer: VPU multiply + sublane (XLU) reduce.
        out = jnp.tanh(jnp.sum(h1 * w2, axis=0, keepdims=True) + b2)    # (1, CHUNK)
        out_ref[0, :, pl.ds(start, CHUNK)] = out * mask
        return carry

    lax.fori_loop(0, n_chunks, body, 0, unroll=True)


def fuse_params(params):
    """Fold W1 and b1 into one fused (E, 64) table (transposed, lane/sublane
    friendly) and lane-replicate w2.  Adding b1 only to the relevance half is
    exact because b1 is added once per document regardless of index."""
    E = params["rel_tab"].shape[1]
    hi = lax.Precision.HIGHEST
    frel = (jnp.dot(params["rel_tab"], params["w1"][:E], precision=hi)
            + params["b1"]).T                                   # (E, 11)
    ftim = jnp.dot(params["time_tab"], params["w1"][E:], precision=hi).T   # (E, 51)
    tab = jnp.zeros((E, NUM_COLS), jnp.float32)
    tab = tab.at[:, : MAX_REL_POS + 1].set(frel)
    tab = tab.at[:, MAX_REL_POS + 1: MAX_REL_POS + 1 + MAX_TIME_POS + 1].set(ftim)
    w2r = jnp.broadcast_to(params["w2"].astype(jnp.float32), (E, CHUNK))
    b2 = params["b2"].astype(jnp.float32).reshape(1)            # (1,) SMEM scalar
    return dict(tab=tab, w2=w2r, b2=b2)


@jax.jit
def examination_forward(batch_rel_pos, batch_time_pos, fused):
    """batch_rel_pos, batch_time_pos: (B, L) int. Returns (B, L) float32."""
    B, L = batch_rel_pos.shape
    n = B * L
    # Row tile: as large as possible (amortize per-step overhead) but derived
    # from n so small problems don't over-pad and n > MAX_ROW_TILE yields >= 2
    # grid steps ("parallel" -> both v7x TensorCores busy).
    row_tile = min(MAX_ROW_TILE, _round_up(n, CHUNK))
    n_pad = _round_up(n, row_tile)
    g = n_pad // row_tile

    # Clip BEFORE packing (negative raw indices would corrupt packed bits),
    # then pack + pad + reshape in one fused elementwise pass.
    rel = jnp.clip(batch_rel_pos.reshape(-1).astype(jnp.int32), 0, MAX_REL_POS)
    tim = jnp.clip(batch_time_pos.reshape(-1).astype(jnp.int32), 0, MAX_TIME_POS)
    packed = rel | (tim << 16)
    packed = jnp.pad(packed, (0, n_pad - n))
    idx = packed.reshape(g, 1, row_tile)

    tab, w2r, b2 = fused["tab"], fused["w2"], fused["b2"]
    E = tab.shape[0]

    out = pl.pallas_call(
        examination_kernel,
        out_shape=jax.ShapeDtypeStruct((g, 1, row_tile), jnp.float32),
        grid_spec=pltpu.PrefetchScalarGridSpec(
            num_scalar_prefetch=0,
            grid=(g,),
            in_specs=[
                pl.BlockSpec((1, 1, row_tile), lambda i: (i, 0, 0)),   # packed idx
                pl.BlockSpec((E, NUM_COLS), lambda i: (0, 0)),         # fused table
                pl.BlockSpec((E, CHUNK), lambda i: (0, 0)),            # w2 (replicated)
                pl.BlockSpec(memory_space=pltpu.MemorySpace.SMEM),     # b2 scalar
            ],
            out_specs=pl.BlockSpec((1, 1, row_tile), lambda i: (i, 0, 0)),
        ),
        compiler_params=pltpu.CompilerParams(
            dimension_semantics=("parallel",)),
    )(idx, tab, w2r, b2)

    return out.reshape(-1)[:n].reshape(B, L)


def init_params(embedding_size, key):
    """Deterministic synthetic parameters mirroring the module's __init__ shapes."""
    E = embedding_size // 2
    k1, k2, k3, k4, k5, k6 = jax.random.split(key, 6)
    rel_tab = jax.random.normal(k1, (MAX_REL_POS + 1, E), jnp.float32)
    rel_tab = rel_tab.at[0].set(0.0)                      # padding_idx=0
    time_tab = jax.random.normal(k2, (MAX_TIME_POS + 1, E), jnp.float32)
    time_tab = time_tab.at[0].set(0.0)
    # Linear layers stored in (in, out) orientation (y = x @ W + b).
    w1 = jax.random.normal(k3, (2 * E, E), jnp.float32) * (1.0 / jnp.sqrt(2.0 * E))
    b1 = jax.random.normal(k4, (1, E), jnp.float32) * 0.01
    w2 = jax.random.normal(k5, (E, 1), jnp.float32) * (1.0 / jnp.sqrt(1.0 * E))
    b2 = jax.random.normal(k6, (1, 1), jnp.float32) * 0.01
    return dict(rel_tab=rel_tab, time_tab=time_tab, w1=w1, b1=b1, w2=w2, b2=b2)


def reference_forward(batch_rel_pos, batch_time_pos, params):
    """Pure-JAX reference matching the PyTorch forward (dropout p=0 / eval)."""
    hi = lax.Precision.HIGHEST
    rel = jnp.clip(batch_rel_pos, 0, MAX_REL_POS)
    tim = jnp.clip(batch_time_pos, 0, MAX_TIME_POS)
    mask = ((rel != 0) | (tim != 0)).astype(jnp.float32)
    e_rel = params["rel_tab"][rel]
    e_tim = params["time_tab"][tim]
    h0 = jnp.concatenate([e_rel, e_tim], axis=-1)
    h1 = jnp.tanh(jnp.dot(h0, params["w1"], precision=hi) + params["b1"][0])
    out = jnp.tanh(jnp.dot(h1, params["w2"], precision=hi) + params["b2"][0])
    return out[..., 0] * mask


if __name__ == "__main__":
    key = jax.random.PRNGKey(0)
    k_params, k_rel, k_time = jax.random.split(key, 3)

    embedding_size = 32          # module arg; internal E = 16
    B, L = 2, 50                 # max_doc_count = 50

    params = init_params(embedding_size, k_params)
    fused = fuse_params(params)

    batch_rel_pos = jax.random.randint(k_rel, (B, L), -1, MAX_REL_POS + 3,
                                       dtype=jnp.int32)
    batch_time_pos = jax.random.randint(k_time, (B, L), -1, MAX_TIME_POS + 5,
                                        dtype=jnp.int32)

    out = examination_forward(batch_rel_pos, batch_time_pos, fused)
    out = jax.block_until_ready(out)

    ref = reference_forward(batch_rel_pos, batch_time_pos, params)
    assert out.shape == (B, L)
    assert jnp.allclose(out, ref, atol=1e-4, rtol=1e-4), "mismatch vs reference"

    print("KERNEL_OK")
</pallas_src>

<mosaic_0001>
module attributes {stable_mosaic.version = 11 : i64} {
  func.func @examination_kernel(%arg0: i32, %arg1: memref<1x1x256xi32, #tpu.memory_space<vmem>>, %arg2: memref<16x64xf32, #tpu.memory_space<vmem>>, %arg3: memref<16x256xf32, #tpu.memory_space<vmem>>, %arg4: memref<1xf32, #tpu.memory_space<smem>>, %arg5: memref<1x1x256xf32, #tpu.memory_space<vmem>>) attributes {dimension_semantics = [#tpu.dimension_semantics<parallel>], iteration_bounds = array<i64: 1>, scalar_prefetch = 0 : i64, scratch_operands = 0 : i64, tpu.core_type = #tpu.core_type<tc>, window_params = [{transform_indices = @transform_0, window_bounds = array<i64: 1, 1, 256>}, {pipeline_mode = #tpu.pipeline_mode<synchronous>, transform_indices = @transform_1, window_bounds = array<i64: 16, 64>}, {pipeline_mode = #tpu.pipeline_mode<synchronous>, transform_indices = @transform_2, window_bounds = array<i64: 16, 256>}, {transform_indices = @transform_3, window_bounds = array<i64: 1>}, {transform_indices = @transform_4, window_bounds = array<i64: 1, 1, 256>}]} {
    %c0 = arith.constant 0 : index
    %c0_0 = arith.constant 0 : index
    %0 = vector.load %arg2[%c0, %c0_0] : memref<16x64xf32, #tpu.memory_space<vmem>>, vector<16x64xf32>
    %c0_1 = arith.constant 0 : index
    %c0_2 = arith.constant 0 : index
    %1 = vector.load %arg3[%c0_1, %c0_2] : memref<16x256xf32, #tpu.memory_space<vmem>>, vector<16x256xf32>
    %c0_3 = arith.constant 0 : index
    %2 = memref.load %arg4[%c0_3] : memref<1xf32, #tpu.memory_space<smem>>
    %c0_i32 = arith.constant 0 : i32
    %c256_i32 = arith.constant 256 : i32
    %3 = arith.muli %c0_i32, %c256_i32 : i32
    %4 = tpu.assume_multiple %3, 256 : i32
    %c0_4 = arith.constant 0 : index
    %c0_5 = arith.constant 0 : index
    %5 = arith.index_cast %4 : i32 to index
    %6 = vector.load %arg1[%c0_4, %c0_5, %5] : memref<1x1x256xi32, #tpu.memory_space<vmem>>, vector<1x1x256xi32>
    %7 = vector.shape_cast %6 : vector<1x1x256xi32> to vector<1x256xi32>
    %c65535_i32 = arith.constant 65535 : i32
    %8 = vector.broadcast %c65535_i32 : i32 to vector<1x256xi32>
    %9 = arith.andi %7, %8 : vector<1x256xi32>
    %c16_i32 = arith.constant 16 : i32
    %10 = vector.broadcast %c16_i32 : i32 to vector<1x256xi32>
    %11 = arith.shrsi %7, %10 : vector<1x256xi32>
    %c11_i32 = arith.constant 11 : i32
    %12 = vector.broadcast %c11_i32 : i32 to vector<1x256xi32>
    %13 = arith.addi %11, %12 : vector<1x256xi32>
    %c0_i32_6 = arith.constant 0 : i32
    %14 = vector.broadcast %c0_i32_6 : i32 to vector<1x256xi32>
    %15 = arith.cmpi ne, %7, %14 : vector<1x256xi32>
    %16 = arith.extui %15 : vector<1x256xi1> to vector<1x256xi32>
    %17 = arith.sitofp %16 : vector<1x256xi32> to vector<1x256xf32>
    %18 = tpu.iota {dimensions = array<i32: 0>} : vector<64x256xi32>
    %19 = vector.broadcast %9 : vector<1x256xi32> to vector<64x256xi32>
    %20 = arith.cmpi eq, %18, %19 : vector<64x256xi32>
    %21 = vector.broadcast %13 : vector<1x256xi32> to vector<64x256xi32>
    %22 = arith.cmpi eq, %18, %21 : vector<64x256xi32>
    %23 = arith.ori %20, %22 : vector<64x256xi1>
    %24 = arith.extui %23 : vector<64x256xi1> to vector<64x256xi32>
    %25 = arith.sitofp %24 : vector<64x256xi32> to vector<64x256xf32>
    %cst = arith.constant dense<0.000000e+00> : vector<16x256xf32>
    %26 = tpu.matmul %0, %25, %cst {dimension_numbers = #tpu.dot_dimension_numbers<[1], [0], [0], [1], [0, 0, 1, 1], [], []>} : vector<16x64xf32>, vector<64x256xf32>, vector<16x256xf32> -> vector<16x256xf32>
    %27 = math.tanh %26 : vector<16x256xf32>
    %28 = arith.mulf %27, %1 : vector<16x256xf32>
    %cst_7 = arith.constant dense<0.000000e+00> : vector<256xf32>
    %29 = vector.multi_reduction <add>, %28, %cst_7 [0] : vector<16x256xf32> to vector<256xf32>
    %30 = vector.shape_cast %29 : vector<256xf32> to vector<1x256xf32>
    %31 = vector.broadcast %2 : f32 to vector<1x256xf32>
    %32 = arith.addf %30, %31 : vector<1x256xf32>
    %33 = math.tanh %32 : vector<1x256xf32>
    %34 = arith.mulf %33, %17 : vector<1x256xf32>
    %c0_8 = arith.constant 0 : index
    %c0_9 = arith.constant 0 : index
    %35 = arith.index_cast %4 : i32 to index
    %36 = vector.load %arg5[%c0_8, %c0_9, %35] : memref<1x1x256xf32, #tpu.memory_space<vmem>>, vector<1x1x256xf32>
    %37 = vector.shape_cast %36 : vector<1x1x256xf32> to vector<1x256xf32>
    %38 = vector.shape_cast %34 : vector<1x256xf32> to vector<1x1x256xf32>
    tpu.vector_store %arg5[%c0_8, %c0_9, %35], %38 {strides = array<i32>} : memref<1x1x256xf32, #tpu.memory_space<vmem>>, vector<1x1x256xf32>,
    %c1_i32 = arith.constant 1 : i32
    return
  }
  func.func @transform_0(%arg0: i32) -> (i32, i32, i32) {
    %c0_i32 = arith.constant 0 : i32
    %c0_i32_0 = arith.constant 0 : i32
    %c0_i32_1 = arith.constant 0 : i32
    return %arg0, %c0_i32, %c0_i32_0 : i32, i32, i32
  }
  func.func @transform_1(%arg0: i32) -> (i32, i32) {
    %c0_i32 = arith.constant 0 : i32
    %c0_i32_0 = arith.constant 0 : i32
    %c0_i32_1 = arith.constant 0 : i32
    return %c0_i32, %c0_i32_0 : i32, i32
  }
  func.func @transform_2(%arg0: i32) -> (i32, i32) {
    %c0_i32 = arith.constant 0 : i32
    %c0_i32_0 = arith.constant 0 : i32
    %c0_i32_1 = arith.constant 0 : i32
    return %c0_i32, %c0_i32_0 : i32, i32
  }
  func.func @transform_3(%arg0: i32) -> i32 {
    %c0_i32 = arith.constant 0 : i32
    %c0_i32_0 = arith.constant 0 : i32
    return %c0_i32 : i32
  }
  func.func @transform_4(%arg0: i32) -> (i32, i32, i32) {
    %c0_i32 = arith.constant 0 : i32
    %c0_i32_0 = arith.constant 0 : i32
    %c0_i32_1 = arith.constant 0 : i32
    return %arg0, %c0_i32, %c0_i32_0 : i32, i32, i32
  }
}

</mosaic_0001>

<bundles_post_ra>
// kernel: examination_forward.1
= control target key start
LH: loop header
LB: loop body
LE: loop exit
PB: predicated region body
PF: predicated region fallthrough
CT: control target
= control target key end

     0   :  { %10 = vsyncpa [#allocation4], 0  ;;  %s404_s15 = smov [#allocation3]   ;;  %s562_s0 = inlined_call_operand.vmem [shape: s32[1,1,256], index: 0, kind: input, shape index: {}]   ;;  %s563_s1 = inlined_call_operand.hbm [shape: f32[16,64], index: 1, kind: input, shape index: {}]   ;;  %s564_s2 = inlined_call_operand.vmem [shape: f32[16,256], index: 2, kind: input, shape index: {}]   ;;  %s565_s3 = inlined_call_operand.<no memory space> [shape: f32[1], index: 3, kind: input, shape index: {}]   ;;  %s566_s4 = inlined_call_operand.vmem [shape: f32[1,1,256], index: 4, kind: output, shape index: {}]  }
   0x1   :  { %s18_s16 = sshll.u32 %s404_s15, 4  ;;  %s380_s19 = scalar_lea.hbm %s563_s1, 256  ;;  %s19_s16 = int_to_ptr.vmem [resolvable:$true] %s18_s16 }
   0x2   :  { %p381_p0 = scmp.ne.s32.totalorder %s563_s1, %s380_s19  ;;  %p384_p1 = scmp.lt.u32.totalorder %s380_s19, %s563_s1 }
   0x4   :  { %p386_p2 = pnand %p384_p1, %p381_p0 }
   0x6   :  { %389 = shalt.err (!%p386_p2)
}
   0x7   :  { %s390_s24 = scalar_lea.vmem %s19_s16, 256  ;;  %p395_p4 = scmp.lt.s32.totalorder %s19_s16, %s19_s16 }
   0x8   :  { %p391_p3 = scmp.ne.s32.totalorder %s19_s16, %s390_s24  ;;  %p396_p5 = scmp.lt.s32.totalorder %s390_s24, %s390_s24 }
   0xa   :  { %p397_p6 = por %p396_p5, %p395_p4 }
   0xc   :  { %p398_p7 = pnand %p397_p6, %p391_p3 }
   0xe   :  { %401 = shalt.err (!%p398_p7)
}
   0xf   :  { %s405_s25 = smov 128   ;;  %s406_s26 = smov 8  }
  0x10   :  { %24 = dma.hbm_to_vmem [thread:$0]  %s563_s1, 256, %s19_s16, [#allocation4], %s405_s25, %s405_s25, %s406_s26  }
  0x11   :  { %402 = dma.done.wait [#allocation4], 256  }
  0x12   :  { %403 = vsyncadd [#allocation4], 4294967040  ;;  %v46_v0 = vlaneseq  ;;  %v407_v1 = vmov 0.0   ;;  %v39_v4 = vld [vmem:[%s562_s0] sm:$0x3]  ;;  %v33_v25 = vld [vmem:[#allocation3 + $0x8] sm:$0xff]  ;;  %v257_v53 = vstv %s565_s3 }
  0x13   :  { %222 = vmatprep.mubr.f32.mxu0 %v407_v1  ;;  %228 = vmatprep.mubr.f32.mxu1 %v407_v1  ;;  %v40_v6 = vand.u32 65535, %v39_v4  ;;  %v41_v7 = vshra.s32 %v39_v4, 16  ;;  %vm43_vm0 = vcmp.ne.s32.totalorder %v39_v4, 0  ;;  %v408_v19 = vmov 1.0|1.0   ;;  %v32_v24 = vld [vmem:[#allocation3] sm:$0xff] }
  0x14   :  { %v448_v2 = vshrl.u32 %v46_v0, 7  ;;  %v460_v9 = vsel %vm43_vm0, 1.0, %v407_v1  ;;  %v34_v30 = vld [vmem:[%s564_s2] sm:$0xff]  ;;  %v36_v31 = vld [vmem:[%s564_s2 + $0x10] sm:$0xff]  ;;  %v35_v33 = vld [vmem:[%s564_s2 + $0x8] sm:$0xff] }
  0x15   :  { %v42_v10 = vadd.s32 11, %v41_v7  ;;  %v37_v36 = vld [vmem:[%s564_s2 + $0x18] sm:$0xff]  ;;  %v409_v59 = vmov 1966171168  }
  0x16   :  { %v451_v3 = vsub.s32 1, %v448_v2  ;;  %v457_v5 = vsub.s32 0, %v448_v2  ;;  %v48_v8 = vadd.s32 8, %v448_v2  ;;  %v49_v17 = vadd.s32 16, %v448_v2 }
  0x17   :  { %v50_v18 = vadd.s32 24, %v448_v2  ;;  %v51_v20 = vadd.s32 32, %v448_v2  ;;  %v52_v21 = vadd.s32 40, %v448_v2  ;;  %v53_v22 = vadd.s32 48, %v448_v2 }
  0x18   :  { %v463_v11 = vrot.slane %v40_v6, %v451_v3  ;;  %v266_v12 = vrot.slane %v460_v9, %v457_v5  ;;  %v468_v13 = vrot.slane %v40_v6, %v457_v5  ;;  %v270_v14 = vrot.slane %v460_v9, %v451_v3 }
  0x19   :  { %v475_v15 = vrot.slane %v42_v10, %v451_v3  ;;  %v479_v16 = vrot.slane %v42_v10, %v457_v5  ;;  %v54_v23 = vadd.s32 56, %v448_v2  ;;  %v279_v60 = vunpack.c.l.s4 %v409_v59 }
  0x1a   :  { %vm64_vm1 = vcmp.eq.s32.totalorder %v448_v2, %v463_v11  ;;  %vm66_vm2 = vcmp.eq.s32.totalorder %v48_v8, %v463_v11  ;;  %vm63_vm6 = vcmp.eq.s32.totalorder %v448_v2, %v468_v13  ;;  %vm65_vm9 = vcmp.eq.s32.totalorder %v48_v8, %v468_v13 }
  0x1b   :  { %vm88_vm3 = vcmp.eq.s32.totalorder %v448_v2, %v475_v15  ;;  %vm90_vm4 = vcmp.eq.s32.totalorder %v48_v8, %v475_v15  ;;  %vm87_vm7 = vcmp.eq.s32.totalorder %v448_v2, %v479_v16  ;;  %vm89_vm10 = vcmp.eq.s32.totalorder %v48_v8, %v479_v16 }
  0x1c   :  { %vm104_vm5 = vmor %vm64_vm1, %vm88_vm3  ;;  %vm68_vm13 = vcmp.eq.s32.totalorder %v49_v17, %v463_v11  ;;  %vm92_vm14 = vcmp.eq.s32.totalorder %v49_v17, %v475_v15  ;;  %vm70_vm0 = vcmp.eq.s32.totalorder %v50_v18, %v463_v11  ;;  %vm94_vm1 = vcmp.eq.s32.totalorder %v50_v18, %v475_v15 }
  0x1d   :  { %vm106_vm8 = vmor %vm66_vm2, %vm90_vm4  ;;  %vm67_vm4 = vcmp.eq.s32.totalorder %v49_v17, %v468_v13  ;;  %v280_v61 = vunpack.c.0.s8 %v279_v60 }
  0x1e   :  { %vm338_vm11 = vmpackc.low %vm106_vm8, %vm104_vm5  ;;  %vm91_vm5 = vcmp.eq.s32.totalorder %v49_v17, %v479_v16  ;;  %vm93_vm8 = vcmp.eq.s32.totalorder %v50_v18, %v479_v16 }
  0x1f   :  { %339 = vmatprep.subr.msk.bf16.mxu0 %vm338_vm11, %v408_v19  ;;  %354 = vmatprep.subr.msk.bf16.mxu1 %vm338_vm11, %v408_v19  ;;  %vm103_vm12 = vmor %vm63_vm6, %vm87_vm7  ;;  %vm69_vm7 = vcmp.eq.s32.totalorder %v50_v18, %v468_v13  ;;  %vm72_vm11 = vcmp.eq.s32.totalorder %v51_v20, %v463_v11  ;;  %v283_v6 = vsub.s32 %v280_v61, %v448_v2 }
  0x20   :  { %vm105_vm15 = vmor %vm65_vm9, %vm89_vm10 }
  0x21   :  { %vm340_vm2 = vmpackc.low %vm105_vm15, %vm103_vm12  ;;  %vm96_vm12 = vcmp.eq.s32.totalorder %v51_v20, %v475_v15  ;;  %vm98_vm15 = vcmp.eq.s32.totalorder %v52_v21, %v475_v15 }
  0x22   :  { %341 = vmatpush1.bf16.msk.msra.mxu0 %vm340_vm2, %v408_v19  ;;  %358 = vmatpush1.bf16.msk.msra.mxu1 %vm340_vm2, %v408_v19  ;;  %vm108_vm3 = vmor %vm68_vm13, %vm92_vm14  ;;  %vm74_vm14 = vcmp.eq.s32.totalorder %v52_v21, %v463_v11  ;;  %vm71_vm2 = vcmp.eq.s32.totalorder %v51_v20, %v468_v13 }
  0x23   :  { %vm110_vm6 = vmor %vm70_vm0, %vm94_vm1 }
  0x24   :  { %vm342_vm9 = vmpackc.low %vm110_vm6, %vm108_vm3  ;;  %vm95_vm3 = vcmp.eq.s32.totalorder %v51_v20, %v479_v16  ;;  %vm97_vm6 = vcmp.eq.s32.totalorder %v52_v21, %v479_v16 }
  0x25   :  { %343 = vmatprep.subr.msk.bf16.mxu0 %vm342_vm9, %v408_v19  ;;  %355 = vmatprep.subr.msk.bf16.mxu1 %vm342_vm9, %v408_v19  ;;  %vm107_vm10 = vmor %vm67_vm4, %vm91_vm5  ;;  %vm73_vm5 = vcmp.eq.s32.totalorder %v52_v21, %v468_v13  ;;  %vm76_vm9 = vcmp.eq.s32.totalorder %v53_v22, %v463_v11 }
  0x26   :  { %vm109_vm13 = vmor %vm69_vm7, %vm93_vm8 }
  0x27   :  { %vm344_vm0 = vmpackc.low %vm109_vm13, %vm107_vm10  ;;  %vm100_vm10 = vcmp.eq.s32.totalorder %v53_v22, %v475_v15  ;;  %vm102_vm13 = vcmp.eq.s32.totalorder %v54_v23, %v475_v15 }
  0x28   :  { %345 = vmatpush1.bf16.msk.msra.mxu0 %vm344_vm0, %v408_v19  ;;  %359 = vmatpush1.bf16.msk.msra.mxu1 %vm344_vm0, %v408_v19  ;;  %vm112_vm1 = vmor %vm72_vm11, %vm96_vm12  ;;  %vm78_vm12 = vcmp.eq.s32.totalorder %v54_v23, %v463_v11  ;;  %vm75_vm0 = vcmp.eq.s32.totalorder %v53_v22, %v468_v13 }
  0x29   :  { %vm114_vm4 = vmor %vm74_vm14, %vm98_vm15 }
  0x2a   :  { %vm346_vm7 = vmpackc.low %vm114_vm4, %vm112_vm1  ;;  %vm99_vm1 = vcmp.eq.s32.totalorder %v53_v22, %v479_v16  ;;  %vm101_vm4 = vcmp.eq.s32.totalorder %v54_v23, %v479_v16 }
  0x2b   :  { %347 = vmatprep.subr.msk.bf16.mxu0 %vm346_vm7, %v408_v19  ;;  %356 = vmatprep.subr.msk.bf16.mxu1 %vm346_vm7, %v408_v19  ;;  %vm111_vm8 = vmor %vm71_vm2, %vm95_vm3  ;;  %vm77_vm3 = vcmp.eq.s32.totalorder %v54_v23, %v468_v13 }
  0x2c   :  { %vm113_vm11 = vmor %vm73_vm5, %vm97_vm6 }
  0x2d   :  { %vm348_vm14 = vmpackc.low %vm113_vm11, %vm111_vm8 }
  0x2e   :  { %349 = vmatpush1.bf16.msk.msra.mxu0 %vm348_vm14, %v408_v19  ;;  %360 = vmatpush1.bf16.msk.msra.mxu1 %vm348_vm14, %v408_v19  ;;  %vm116_vm15 = vmor %vm76_vm9, %vm100_vm10  ;;  %vm151_vm9 = vcmask 523264   ;;  %vm295_vm10 = vcmp.lt.s32.totalorder %v46_v0, 256 }
  0x2f   :  { %vm118_vm2 = vmor %vm78_vm12, %vm102_vm13 }
  0x30   :  { %vm350_vm5 = vmpackc.low %vm118_vm2, %vm116_vm15 }
  0x31   :  { %351 = vmatprep.subr.msk.bf16.mxu0 %vm350_vm5, %v408_v19  ;;  %357 = vmatprep.subr.msk.bf16.mxu1 %vm350_vm5, %v408_v19  ;;  %vm115_vm6 = vmor %vm75_vm0, %vm99_vm1 }
  0x32   :  { %vm117_vm7 = vmor %vm77_vm3, %vm101_vm4 }
  0x33   :  { %vm352_vm8 = vmpackc.low %vm117_vm7, %vm115_vm6 }
  0x34   :  { %353 = vmatpush1.bf16.msk.msra.mxu0 %vm352_vm8, %v408_v19  ;;  %361 = vmatpush1.bf16.msk.msra.mxu1 %vm352_vm8, %v408_v19 }
  0x37   :  { %336 = vmatmul.mubr.msk.f32.vlgmr.msra.gmra.mrb[0].mxu0 %vm151_vm9, %v32_v24  ;;  %337 = vmatmul.mubr.msk.f32.vlgmr.msra.gmra.mrb[0].mxu1 %vm151_vm9, %v33_v25 }
 0x10a   :  { %v224_v26 = vpop.f32.mrb[0].mxu0  ;;  %v230_v27 = vpop.f32.mrb[0].mxu1 }
 0x10b   :  { %368 = vtanh.f32 %v224_v26  ;;  %v226_v28 = vpop.f32.mrb[1].mxu0  ;;  %v232_v29 = vpop.f32.mrb[1].mxu1 }
 0x10c   :  { %370 = vtanh.f32 %v230_v27 }
 0x10d   :  { %372 = vtanh.f32 %v226_v28 }
 0x10e   :  { %374 = vtanh.f32 %v232_v29 }
 0x115   :  { %v369_v32 = vpop.eup %368 }
 0x116   :  { %v371_v34 = vpop.eup %370  ;;  %v239_v35 = vmul.f32 %v369_v32, %v34_v30 }
 0x117   :  { %v373_v37 = vpop.eup %372  ;;  %v241_v38 = vmul.f32 %v371_v34, %v36_v31 }
 0x118   :  { %v375_v39 = vpop.eup %374  ;;  %v240_v40 = vmul.f32 %v373_v37, %v35_v33 }
 0x119   :  { %v243_v41 = vadd.f32 %v241_v38, %v239_v35  ;;  %v242_v42 = vmul.f32 %v375_v39, %v37_v36 }
 0x11b   :  { %v244_v43 = vrot.slane %v243_v41, 4  ;;  %v250_v44 = vadd.f32 %v242_v42, %v240_v40 }
 0x11d   :  { %v245_v45 = vadd.f32 %v244_v43, %v243_v41  ;;  %v251_v46 = vrot.slane %v250_v44, 4 }
 0x11f   :  { %v246_v47 = vrot.slane %v245_v45, 2  ;;  %v252_v48 = vadd.f32 %v251_v46, %v250_v44 }
 0x121   :  { %v247_v49 = vadd.f32 %v246_v47, %v245_v45  ;;  %v253_v50 = vrot.slane %v252_v48, 2 }
 0x123   :  { %v248_v51 = vrot.slane %v247_v49, 1  ;;  %v254_v52 = vadd.f32 %v253_v50, %v252_v48 }
 0x125   :  { %v249_v54 = vadd.f32 %v248_v51, %v247_v49  ;;  %v255_v55 = vrot.slane %v254_v52, 1 }
 0x127   :  { %v258_v56 = vadd.f32 %v257_v53, %v249_v54  ;;  %v256_v57 = vadd.f32 %v255_v55, %v254_v52 }
 0x129   :  { %376 = vtanh.f32 %v258_v56  ;;  %v259_v58 = vadd.f32 %v257_v53, %v256_v57 }
 0x12b   :  { %378 = vtanh.f32 %v259_v58 }
 0x133   :  { %v377_v62 = vpop.eup %376 }
 0x134   :  { %v273_v63 = vmul.f32 %v377_v62, %v266_v12 }
 0x135   :  { %v379_v1 = vpop.eup %378 }
 0x136   :  { %v274_v4 = vmul.f32 %v379_v1, %v270_v14 }
 0x138   :  { %v277_v7 = vcombine.low %v273_v63, %v274_v4 }
 0x13a   :  { %v284_v8 = vrot.slane %v277_v7, %v283_v6 }
 0x13c   :  { %v291_v10 = vrot.slane %v284_v8, %v283_v6 }
 0x13e   :  { %297 = vst.msk [vmem:[%s566_s4] sm:$0x3] %vm295_vm10, %v291_v10 }
 0x13f   :  { %302 = vsyncpa [#allocation4], 1 }

</bundles_post_ra>
